<compile_context>
chip_gen: v7x
topology: tpu7x:2x2x1
jax: 0.10.0
libtpu: 0.0.40
codegen_flags: <defaults>
</compile_context>

<pallas_src>
import functools

import jax
import jax.numpy as jnp
from jax import lax
from jax.experimental import pallas as pl
from jax.experimental.pallas import tpu as pltpu


def _round_up(x, m):
    return ((x + m - 1) // m) * m


def _fold_bn(gamma, beta, mean, var, eps=1e-5):
    scale = gamma / jnp.sqrt(var + eps)
    bias = beta - mean * scale
    return scale, bias


def _im2col_bf16(x_nhwc, ksize, stride, hout, wout):
    """Cast to bf16 FIRST, then expand: (N,H,W,C) -> (N, hout*wout, k*k*C)."""
    xb = x_nhwc.astype(jnp.bfloat16)
    xp = jnp.pad(xb, ((0, 0), (1, 1), (1, 1), (0, 0)))
    taps = []
    for kh in range(ksize):
        for kw in range(ksize):
            taps.append(xp[:, kh:kh + (hout - 1) * stride + 1:stride,
                              kw:kw + (wout - 1) * stride + 1:stride, :])
    p = jnp.concatenate(taps, axis=-1)                 # (N, hout, wout, k*k*C)
    return p.reshape(p.shape[0], hout * wout, -1)


# ---------------------------------------------------------------------------
# Fused kernel: conv1+bn1+relu (matmul) -> VMEM tile -> conv2 (9 sub-matmuls)
#               + folded bn2 + shortcut (routing matmul) + relu
# ---------------------------------------------------------------------------
def _make_block_kernel(H1, W1, Pp):
    M1 = H1 * W1

    def kernel(p_ref, w1_ref, b1_ref, w2_ref, b2_ref, s_ref, o_ref, h1_scr):
        # Zero the halo'd conv1 scratch each step (cheap; megacore-safe).
        h1_scr[...] = jnp.zeros_like(h1_scr)

        p = p_ref[...]                                         # (M1, K1) bf16
        # conv1 + folded bn1 + relu, bf16 MXU operands, f32 accumulation.
        h = jnp.dot(p, w1_ref[...], preferred_element_type=jnp.float32)
        h = jnp.maximum(h + b1_ref[...], 0.0)                  # (M1, Pp) f32
        # Place conv1 output in the interior of the halo'd tile (halo = 0 pad).
        h1_scr[1:1 + H1, 1:1 + W1, :] = h.reshape(H1, W1, Pp)

        # Shortcut: centre tap of the conv1 patches is x[::stride, ::stride];
        # route it to the right output channels with a 0/1 matrix on the MXU.
        acc = jnp.dot(p, s_ref[...], preferred_element_type=jnp.float32)
        acc = acc + b2_ref[...]

        # conv2 as 9 shifted sub-matmuls over the VMEM-resident conv1 tile.
        for t in range(9):
            kh, kw = t // 3, t % 3
            tap = h1_scr[kh:kh + H1, kw:kw + W1, :].reshape(M1, Pp)
            acc = acc + jnp.dot(tap.astype(jnp.bfloat16),
                                w2_ref[t * Pp:(t + 1) * Pp, :],
                                preferred_element_type=jnp.float32)

        o_ref[...] = jnp.maximum(acc, 0.0).astype(o_ref.dtype)

    return kernel


# ---------------------------------------------------------------------------
# Wrapper: layout, BN folding, weight padding, shortcut routing matrix
# ---------------------------------------------------------------------------
def basic_block_forward(x, params, *, stride=1, option='A',
                        out_dtype=jnp.float32):
    """x: (N, Cin, H, W) f32 (PyTorch NCHW). Returns (N, planes, H1, W1) f32."""
    N, Cin, H, W = x.shape
    w1 = params['w1']                                  # (3, 3, Cin, P)  HWIO
    w2 = params['w2']                                  # (3, 3, P, P)
    P = w1.shape[-1]
    H1 = (H + 2 - 3) // stride + 1
    W1 = (W + 2 - 3) // stride + 1
    M1 = H1 * W1
    M = N * M1
    Pp = _round_up(P, 128)                 # lane-dense output channels (=128)
    K1 = 9 * Cin
    K1p = _round_up(K1, 16)                # bf16 pack granularity only

    # NCHW -> NHWC, bf16 im2col for conv1 (the only HBM-expanded tensor).
    x_nhwc = jnp.transpose(x, (0, 2, 3, 1))
    patches = _im2col_bf16(x_nhwc, 3, stride, H1, W1).reshape(M, K1)
    if K1p != K1:
        patches = jnp.pad(patches, ((0, 0), (0, K1p - K1)))

    # Fold BN (eval mode) into weights/bias in f32, pad channels to Pp, cast.
    s1, b1 = _fold_bn(params['bn1_gamma'], params['bn1_beta'],
                      params['bn1_mean'], params['bn1_var'])
    s2, b2 = _fold_bn(params['bn2_gamma'], params['bn2_beta'],
                      params['bn2_mean'], params['bn2_var'])
    w1f = w1.reshape(K1, P).astype(jnp.float32) * s1.astype(jnp.float32)[None, :]
    w1p = jnp.pad(w1f, ((0, K1p - K1), (0, Pp - P))).astype(jnp.bfloat16)
    b1p = jnp.pad(b1.astype(jnp.float32), (0, Pp - P)).reshape(1, Pp)
    w2f = w2.reshape(9, P, P).astype(jnp.float32) * s2.astype(jnp.float32)[None, None, :]
    w2p = jnp.pad(w2f, ((0, 0), (0, Pp - P), (0, Pp - P)))
    w2p = w2p.reshape(9 * Pp, Pp).astype(jnp.bfloat16)
    b2p = jnp.pad(b2.astype(jnp.float32), (0, Pp - P)).reshape(1, Pp)

    # Shortcut routing matrix (identity or option-A downsample + channel pad).
    if stride != 1 or Cin != P:
        if option != 'A':
            # TODO(synk): option 'B' (1x1 conv + BN shortcut) not implemented.
            raise NotImplementedError("option B shortcut not implemented")
        off = P // 4
        assert Cin + 2 * (P // 4) == P, "option-A channel pad mismatch"
    else:
        off = 0
    s_mat = jnp.zeros((K1p, Pp), jnp.float32)
    s_mat = s_mat.at[4 * Cin + jnp.arange(Cin), off + jnp.arange(Cin)].set(1.0)
    s_mat = s_mat.astype(jnp.bfloat16)

    kernel = _make_block_kernel(H1, W1, Pp)

    flops = 2 * 2 * M * K1p * Pp + 9 * 2 * M * Pp * Pp
    bytes_accessed = (patches.size * 2 + w1p.size * 2 + w2p.size * 2 +
                      s_mat.size * 2 + (b1p.size + b2p.size) * 4 +
                      M * Pp * jnp.dtype(out_dtype).itemsize)

    out = pl.pallas_call(
        kernel,
        out_shape=jax.ShapeDtypeStruct((M, Pp), out_dtype),
        grid=(N,),                                    # one image per grid step
        in_specs=[
            pl.BlockSpec((M1, K1p), lambda n: (n, 0)),     # patches (pipelined)
            pl.BlockSpec((K1p, Pp), lambda n: (0, 0)),     # w1 (resident)
            pl.BlockSpec((1, Pp), lambda n: (0, 0)),       # b1 (resident)
            pl.BlockSpec((9 * Pp, Pp), lambda n: (0, 0)),  # w2 (resident)
            pl.BlockSpec((1, Pp), lambda n: (0, 0)),       # b2 (resident)
            pl.BlockSpec((K1p, Pp), lambda n: (0, 0)),     # shortcut routing
        ],
        out_specs=pl.BlockSpec((M1, Pp), lambda n: (n, 0)),
        scratch_shapes=[pltpu.VMEM((H1 + 2, W1 + 2, Pp), jnp.float32)],
        compiler_params=pltpu.CompilerParams(
            dimension_semantics=("parallel",)),
        cost_estimate=pl.CostEstimate(flops=flops, transcendentals=0,
                                      bytes_accessed=bytes_accessed),
    )(patches, w1p, b1p, w2p, b2p, s_mat)

    out = out[:, :P].reshape(N, H1, W1, P)
    return jnp.transpose(out, (0, 3, 1, 2))


# ---------------------------------------------------------------------------
# Pure-JAX f32 reference (lax conv) for correctness check
# ---------------------------------------------------------------------------
def _reference(x, params, *, stride=1):
    w1 = jnp.transpose(params['w1'], (3, 2, 0, 1))   # OIHW
    w2 = jnp.transpose(params['w2'], (3, 2, 0, 1))
    P, Cin = w1.shape[0], x.shape[1]

    def conv(inp, w, s):
        return lax.conv_general_dilated(inp, w, (s, s), ((1, 1), (1, 1)),
                                        dimension_numbers=('NCHW', 'OIHW', 'NCHW'))

    def bn(inp, g, b, m, v, eps=1e-5):
        r = lambda t: t[None, :, None, None]
        return (inp - r(m)) / jnp.sqrt(r(v) + eps) * r(g) + r(b)

    out = jax.nn.relu(bn(conv(x, w1, stride), params['bn1_gamma'], params['bn1_beta'],
                         params['bn1_mean'], params['bn1_var']))
    out = bn(conv(out, w2, 1), params['bn2_gamma'], params['bn2_beta'],
             params['bn2_mean'], params['bn2_var'])
    if stride != 1 or Cin != P:
        sc = x[:, :, ::2, ::2]
        sc = jnp.pad(sc, ((0, 0), (P // 4, P // 4), (0, 0), (0, 0)))
    else:
        sc = x
    return jax.nn.relu(out + sc)


if __name__ == "__main__":
    key = jax.random.PRNGKey(0)
    N, Cin, H, W = 2, 4, 16, 16
    planes, stride = 8, 2                            # triggers option-A shortcut

    ks = jax.random.split(key, 12)
    x = jax.random.normal(ks[0], (N, Cin, H, W), jnp.float32)
    params = dict(
        w1=jax.random.normal(ks[1], (3, 3, Cin, planes), jnp.float32) * 0.2,
        bn1_gamma=jax.random.uniform(ks[2], (planes,), jnp.float32, 0.5, 1.5),
        bn1_beta=jax.random.normal(ks[3], (planes,), jnp.float32) * 0.1,
        bn1_mean=jax.random.normal(ks[4], (planes,), jnp.float32) * 0.1,
        bn1_var=jax.random.uniform(ks[5], (planes,), jnp.float32, 0.5, 1.5),
        w2=jax.random.normal(ks[6], (3, 3, planes, planes), jnp.float32) * 0.2,
        bn2_gamma=jax.random.uniform(ks[7], (planes,), jnp.float32, 0.5, 1.5),
        bn2_beta=jax.random.normal(ks[8], (planes,), jnp.float32) * 0.1,
        bn2_mean=jax.random.normal(ks[9], (planes,), jnp.float32) * 0.1,
        bn2_var=jax.random.uniform(ks[10], (planes,), jnp.float32, 0.5, 1.5),
    )

    fwd = jax.jit(functools.partial(basic_block_forward, stride=stride, option='A'))
    out = jax.block_until_ready(fwd(x, params))

    ref = _reference(x, params, stride=stride)
    assert out.shape == (N, planes, H // stride, W // stride), out.shape
    # bf16 MXU operands (input cast to bf16) -> relative max-abs tolerance.
    err = float(jnp.max(jnp.abs(out - ref)))
    denom = float(jnp.max(jnp.abs(ref))) + 1e-6
    assert err / denom < 3e-2, (err, denom)

    print("KERNEL_OK")
</pallas_src>

<mosaic_0001>
module attributes {stable_mosaic.version = 11 : i64} {
  func.func @kernel(%arg0: i32, %arg1: memref<64x48xbf16, #tpu.memory_space<vmem>>, %arg2: memref<48x128xbf16, #tpu.memory_space<vmem>>, %arg3: memref<1x128xf32, #tpu.memory_space<vmem>>, %arg4: memref<1152x128xbf16, #tpu.memory_space<vmem>>, %arg5: memref<1x128xf32, #tpu.memory_space<vmem>>, %arg6: memref<48x128xbf16, #tpu.memory_space<vmem>>, %arg7: memref<64x128xf32, #tpu.memory_space<vmem>>, %arg8: memref<10x10x128xf32, #tpu.memory_space<vmem>>) attributes {dimension_semantics = [#tpu.dimension_semantics<parallel>], iteration_bounds = array<i64: 2>, scalar_prefetch = 0 : i64, scratch_operands = 1 : i64, tpu.core_type = #tpu.core_type<tc>, window_params = [{transform_indices = @transform_0, window_bounds = array<i64: 64, 48>}, {pipeline_mode = #tpu.pipeline_mode<synchronous>, transform_indices = @transform_1, window_bounds = array<i64: 48, 128>}, {pipeline_mode = #tpu.pipeline_mode<synchronous>, transform_indices = @transform_2, window_bounds = array<i64: 1, 128>}, {pipeline_mode = #tpu.pipeline_mode<synchronous>, transform_indices = @transform_3, window_bounds = array<i64: 1152, 128>}, {pipeline_mode = #tpu.pipeline_mode<synchronous>, transform_indices = @transform_4, window_bounds = array<i64: 1, 128>}, {pipeline_mode = #tpu.pipeline_mode<synchronous>, transform_indices = @transform_5, window_bounds = array<i64: 48, 128>}, {transform_indices = @transform_6, window_bounds = array<i64: 64, 128>}]} {
    %cst = arith.constant 0.000000e+00 : f32
    %0 = vector.broadcast %cst : f32 to vector<10x10x128xf32>
    %c0 = arith.constant 0 : index
    %c0_0 = arith.constant 0 : index
    %c0_1 = arith.constant 0 : index
    %1 = vector.load %arg8[%c0, %c0_0, %c0_1] : memref<10x10x128xf32, #tpu.memory_space<vmem>>, vector<10x10x128xf32>
    tpu.vector_store %arg8[%c0, %c0_0, %c0_1], %0 {strides = array<i32>} : memref<10x10x128xf32, #tpu.memory_space<vmem>>, vector<10x10x128xf32>,
    %c0_2 = arith.constant 0 : index
    %c0_3 = arith.constant 0 : index
    %2 = vector.load %arg1[%c0_2, %c0_3] : memref<64x48xbf16, #tpu.memory_space<vmem>>, vector<64x48xbf16>
    %c0_4 = arith.constant 0 : index
    %c0_5 = arith.constant 0 : index
    %3 = vector.load %arg2[%c0_4, %c0_5] : memref<48x128xbf16, #tpu.memory_space<vmem>>, vector<48x128xbf16>
    %cst_6 = arith.constant dense<0.000000e+00> : vector<64x128xf32>
    %4 = tpu.matmul %2, %3, %cst_6 {dimension_numbers = #tpu.dot_dimension_numbers<[1], [0], [0], [1], [0, 0, 1, 1], [], []>} : vector<64x48xbf16>, vector<48x128xbf16>, vector<64x128xf32> -> vector<64x128xf32>
    %c0_7 = arith.constant 0 : index
    %c0_8 = arith.constant 0 : index
    %5 = vector.load %arg3[%c0_7, %c0_8] : memref<1x128xf32, #tpu.memory_space<vmem>>, vector<1x128xf32>
    %6 = vector.broadcast %5 : vector<1x128xf32> to vector<64x128xf32>
    %7 = arith.addf %4, %6 : vector<64x128xf32>
    %cst_9 = arith.constant 0.000000e+00 : f32
    %8 = vector.broadcast %cst_9 : f32 to vector<64x128xf32>
    %9 = arith.maximumf %7, %8 : vector<64x128xf32>
    %10 = vector.shape_cast %9 : vector<64x128xf32> to vector<8x8x128xf32>
    %c1 = arith.constant 1 : index
    %c1_10 = arith.constant 1 : index
    %c0_11 = arith.constant 0 : index
    %11 = vector.load %arg8[%c1, %c1_10, %c0_11] : memref<10x10x128xf32, #tpu.memory_space<vmem>>, vector<8x8x128xf32>
    tpu.vector_store %arg8[%c1, %c1_10, %c0_11], %10 {strides = array<i32>} : memref<10x10x128xf32, #tpu.memory_space<vmem>>, vector<8x8x128xf32>,
    %c0_12 = arith.constant 0 : index
    %c0_13 = arith.constant 0 : index
    %12 = vector.load %arg6[%c0_12, %c0_13] : memref<48x128xbf16, #tpu.memory_space<vmem>>, vector<48x128xbf16>
    %cst_14 = arith.constant dense<0.000000e+00> : vector<64x128xf32>
    %13 = tpu.matmul %2, %12, %cst_14 {dimension_numbers = #tpu.dot_dimension_numbers<[1], [0], [0], [1], [0, 0, 1, 1], [], []>} : vector<64x48xbf16>, vector<48x128xbf16>, vector<64x128xf32> -> vector<64x128xf32>
    %c0_15 = arith.constant 0 : index
    %c0_16 = arith.constant 0 : index
    %14 = vector.load %arg5[%c0_15, %c0_16] : memref<1x128xf32, #tpu.memory_space<vmem>>, vector<1x128xf32>
    %15 = vector.broadcast %14 : vector<1x128xf32> to vector<64x128xf32>
    %16 = arith.addf %13, %15 : vector<64x128xf32>
    %c0_17 = arith.constant 0 : index
    %c0_18 = arith.constant 0 : index
    %c0_19 = arith.constant 0 : index
    %17 = vector.load %arg8[%c0_17, %c0_18, %c0_19] : memref<10x10x128xf32, #tpu.memory_space<vmem>>, vector<8x8x128xf32>
    %18 = vector.shape_cast %17 : vector<8x8x128xf32> to vector<64x128xf32>
    %19 = arith.truncf %18 : vector<64x128xf32> to vector<64x128xbf16>
    %c0_20 = arith.constant 0 : index
    %c0_21 = arith.constant 0 : index
    %20 = vector.load %arg4[%c0_20, %c0_21] : memref<1152x128xbf16, #tpu.memory_space<vmem>>, vector<128x128xbf16>
    %cst_22 = arith.constant dense<0.000000e+00> : vector<64x128xf32>
    %21 = tpu.matmul %19, %20, %cst_22 {dimension_numbers = #tpu.dot_dimension_numbers<[1], [0], [0], [1], [0, 0, 1, 1], [], []>} : vector<64x128xbf16>, vector<128x128xbf16>, vector<64x128xf32> -> vector<64x128xf32>
    %22 = arith.addf %16, %21 : vector<64x128xf32>
    %c0_23 = arith.constant 0 : index
    %c1_24 = arith.constant 1 : index
    %c0_25 = arith.constant 0 : index
    %23 = vector.load %arg8[%c0_23, %c1_24, %c0_25] : memref<10x10x128xf32, #tpu.memory_space<vmem>>, vector<8x8x128xf32>
    %24 = vector.shape_cast %23 : vector<8x8x128xf32> to vector<64x128xf32>
    %25 = arith.truncf %24 : vector<64x128xf32> to vector<64x128xbf16>
    %c128 = arith.constant 128 : index
    %c0_26 = arith.constant 0 : index
    %26 = vector.load %arg4[%c128, %c0_26] : memref<1152x128xbf16, #tpu.memory_space<vmem>>, vector<128x128xbf16>
    %cst_27 = arith.constant dense<0.000000e+00> : vector<64x128xf32>
    %27 = tpu.matmul %25, %26, %cst_27 {dimension_numbers = #tpu.dot_dimension_numbers<[1], [0], [0], [1], [0, 0, 1, 1], [], []>} : vector<64x128xbf16>, vector<128x128xbf16>, vector<64x128xf32> -> vector<64x128xf32>
    %28 = arith.addf %22, %27 : vector<64x128xf32>
    %c0_28 = arith.constant 0 : index
    %c2 = arith.constant 2 : index
    %c0_29 = arith.constant 0 : index
    %29 = vector.load %arg8[%c0_28, %c2, %c0_29] : memref<10x10x128xf32, #tpu.memory_space<vmem>>, vector<8x8x128xf32>
    %30 = vector.shape_cast %29 : vector<8x8x128xf32> to vector<64x128xf32>
    %31 = arith.truncf %30 : vector<64x128xf32> to vector<64x128xbf16>
    %c256 = arith.constant 256 : index
    %c0_30 = arith.constant 0 : index
    %32 = vector.load %arg4[%c256, %c0_30] : memref<1152x128xbf16, #tpu.memory_space<vmem>>, vector<128x128xbf16>
    %cst_31 = arith.constant dense<0.000000e+00> : vector<64x128xf32>
    %33 = tpu.matmul %31, %32, %cst_31 {dimension_numbers = #tpu.dot_dimension_numbers<[1], [0], [0], [1], [0, 0, 1, 1], [], []>} : vector<64x128xbf16>, vector<128x128xbf16>, vector<64x128xf32> -> vector<64x128xf32>
    %34 = arith.addf %28, %33 : vector<64x128xf32>
    %c1_32 = arith.constant 1 : index
    %c0_33 = arith.constant 0 : index
    %c0_34 = arith.constant 0 : index
    %35 = vector.load %arg8[%c1_32, %c0_33, %c0_34] : memref<10x10x128xf32, #tpu.memory_space<vmem>>, vector<8x8x128xf32>
    %36 = vector.shape_cast %35 : vector<8x8x128xf32> to vector<64x128xf32>
    %37 = arith.truncf %36 : vector<64x128xf32> to vector<64x128xbf16>
    %c384 = arith.constant 384 : index
    %c0_35 = arith.constant 0 : index
    %38 = vector.load %arg4[%c384, %c0_35] : memref<1152x128xbf16, #tpu.memory_space<vmem>>, vector<128x128xbf16>
    %cst_36 = arith.constant dense<0.000000e+00> : vector<64x128xf32>
    %39 = tpu.matmul %37, %38, %cst_36 {dimension_numbers = #tpu.dot_dimension_numbers<[1], [0], [0], [1], [0, 0, 1, 1], [], []>} : vector<64x128xbf16>, vector<128x128xbf16>, vector<64x128xf32> -> vector<64x128xf32>
    %40 = arith.addf %34, %39 : vector<64x128xf32>
    %c1_37 = arith.constant 1 : index
    %c1_38 = arith.constant 1 : index
    %c0_39 = arith.constant 0 : index
    %41 = vector.load %arg8[%c1_37, %c1_38, %c0_39] : memref<10x10x128xf32, #tpu.memory_space<vmem>>, vector<8x8x128xf32>
    %42 = vector.shape_cast %41 : vector<8x8x128xf32> to vector<64x128xf32>
    %43 = arith.truncf %42 : vector<64x128xf32> to vector<64x128xbf16>
    %c512 = arith.constant 512 : index
    %c0_40 = arith.constant 0 : index
    %44 = vector.load %arg4[%c512, %c0_40] : memref<1152x128xbf16, #tpu.memory_space<vmem>>, vector<128x128xbf16>
    %cst_41 = arith.constant dense<0.000000e+00> : vector<64x128xf32>
    %45 = tpu.matmul %43, %44, %cst_41 {dimension_numbers = #tpu.dot_dimension_numbers<[1], [0], [0], [1], [0, 0, 1, 1], [], []>} : vector<64x128xbf16>, vector<128x128xbf16>, vector<64x128xf32> -> vector<64x128xf32>
    %46 = arith.addf %40, %45 : vector<64x128xf32>
    %c1_42 = arith.constant 1 : index
    %c2_43 = arith.constant 2 : index
    %c0_44 = arith.constant 0 : index
    %47 = vector.load %arg8[%c1_42, %c2_43, %c0_44] : memref<10x10x128xf32, #tpu.memory_space<vmem>>, vector<8x8x128xf32>
    %48 = vector.shape_cast %47 : vector<8x8x128xf32> to vector<64x128xf32>
    %49 = arith.truncf %48 : vector<64x128xf32> to vector<64x128xbf16>
    %c640 = arith.constant 640 : index
    %c0_45 = arith.constant 0 : index
    %50 = vector.load %arg4[%c640, %c0_45] : memref<1152x128xbf16, #tpu.memory_space<vmem>>, vector<128x128xbf16>
    %cst_46 = arith.constant dense<0.000000e+00> : vector<64x128xf32>
    %51 = tpu.matmul %49, %50, %cst_46 {dimension_numbers = #tpu.dot_dimension_numbers<[1], [0], [0], [1], [0, 0, 1, 1], [], []>} : vector<64x128xbf16>, vector<128x128xbf16>, vector<64x128xf32> -> vector<64x128xf32>
    %52 = arith.addf %46, %51 : vector<64x128xf32>
    %c2_47 = arith.constant 2 : index
    %c0_48 = arith.constant 0 : index
    %c0_49 = arith.constant 0 : index
    %53 = vector.load %arg8[%c2_47, %c0_48, %c0_49] : memref<10x10x128xf32, #tpu.memory_space<vmem>>, vector<8x8x128xf32>
    %54 = vector.shape_cast %53 : vector<8x8x128xf32> to vector<64x128xf32>
    %55 = arith.truncf %54 : vector<64x128xf32> to vector<64x128xbf16>
    %c768 = arith.constant 768 : index
    %c0_50 = arith.constant 0 : index
    %56 = vector.load %arg4[%c768, %c0_50] : memref<1152x128xbf16, #tpu.memory_space<vmem>>, vector<128x128xbf16>
    %cst_51 = arith.constant dense<0.000000e+00> : vector<64x128xf32>
    %57 = tpu.matmul %55, %56, %cst_51 {dimension_numbers = #tpu.dot_dimension_numbers<[1], [0], [0], [1], [0, 0, 1, 1], [], []>} : vector<64x128xbf16>, vector<128x128xbf16>, vector<64x128xf32> -> vector<64x128xf32>
    %58 = arith.addf %52, %57 : vector<64x128xf32>
    %c2_52 = arith.constant 2 : index
    %c1_53 = arith.constant 1 : index
    %c0_54 = arith.constant 0 : index
    %59 = vector.load %arg8[%c2_52, %c1_53, %c0_54] : memref<10x10x128xf32, #tpu.memory_space<vmem>>, vector<8x8x128xf32>
    %60 = vector.shape_cast %59 : vector<8x8x128xf32> to vector<64x128xf32>
    %61 = arith.truncf %60 : vector<64x128xf32> to vector<64x128xbf16>
    %c896 = arith.constant 896 : index
    %c0_55 = arith.constant 0 : index
    %62 = vector.load %arg4[%c896, %c0_55] : memref<1152x128xbf16, #tpu.memory_space<vmem>>, vector<128x128xbf16>
    %cst_56 = arith.constant dense<0.000000e+00> : vector<64x128xf32>
    %63 = tpu.matmul %61, %62, %cst_56 {dimension_numbers = #tpu.dot_dimension_numbers<[1], [0], [0], [1], [0, 0, 1, 1], [], []>} : vector<64x128xbf16>, vector<128x128xbf16>, vector<64x128xf32> -> vector<64x128xf32>
    %64 = arith.addf %58, %63 : vector<64x128xf32>
    %c2_57 = arith.constant 2 : index
    %c2_58 = arith.constant 2 : index
    %c0_59 = arith.constant 0 : index
    %65 = vector.load %arg8[%c2_57, %c2_58, %c0_59] : memref<10x10x128xf32, #tpu.memory_space<vmem>>, vector<8x8x128xf32>
    %66 = vector.shape_cast %65 : vector<8x8x128xf32> to vector<64x128xf32>
    %67 = arith.truncf %66 : vector<64x128xf32> to vector<64x128xbf16>
    %c1024 = arith.constant 1024 : index
    %c0_60 = arith.constant 0 : index
    %68 = vector.load %arg4[%c1024, %c0_60] : memref<1152x128xbf16, #tpu.memory_space<vmem>>, vector<128x128xbf16>
    %cst_61 = arith.constant dense<0.000000e+00> : vector<64x128xf32>
    %69 = tpu.matmul %67, %68, %cst_61 {dimension_numbers = #tpu.dot_dimension_numbers<[1], [0], [0], [1], [0, 0, 1, 1], [], []>} : vector<64x128xbf16>, vector<128x128xbf16>, vector<64x128xf32> -> vector<64x128xf32>
    %70 = arith.addf %64, %69 : vector<64x128xf32>
    %cst_62 = arith.constant 0.000000e+00 : f32
    %71 = vector.broadcast %cst_62 : f32 to vector<64x128xf32>
    %72 = arith.maximumf %70, %71 : vector<64x128xf32>
    %c0_63 = arith.constant 0 : index
    %c0_64 = arith.constant 0 : index
    %73 = vector.load %arg7[%c0_63, %c0_64] : memref<64x128xf32, #tpu.memory_space<vmem>>, vector<64x128xf32>
    tpu.vector_store %arg7[%c0_63, %c0_64], %72 {strides = array<i32>} : memref<64x128xf32, #tpu.memory_space<vmem>>, vector<64x128xf32>,
    return
  }
  func.func @transform_0(%arg0: i32) -> (i32, i32) {
    %c0_i32 = arith.constant 0 : i32
    %c0_i32_0 = arith.constant 0 : i32
    return %arg0, %c0_i32 : i32, i32
  }
  func.func @transform_1(%arg0: i32) -> (i32, i32) {
    %c0_i32 = arith.constant 0 : i32
    %c0_i32_0 = arith.constant 0 : i32
    %c0_i32_1 = arith.constant 0 : i32
    return %c0_i32, %c0_i32_0 : i32, i32
  }
  func.func @transform_2(%arg0: i32) -> (i32, i32) {
    %c0_i32 = arith.constant 0 : i32
    %c0_i32_0 = arith.constant 0 : i32
    %c0_i32_1 = arith.constant 0 : i32
    return %c0_i32, %c0_i32_0 : i32, i32
  }
  func.func @transform_3(%arg0: i32) -> (i32, i32) {
    %c0_i32 = arith.constant 0 : i32
    %c0_i32_0 = arith.constant 0 : i32
    %c0_i32_1 = arith.constant 0 : i32
    return %c0_i32, %c0_i32_0 : i32, i32
  }
  func.func @transform_4(%arg0: i32) -> (i32, i32) {
    %c0_i32 = arith.constant 0 : i32
    %c0_i32_0 = arith.constant 0 : i32
    %c0_i32_1 = arith.constant 0 : i32
    return %c0_i32, %c0_i32_0 : i32, i32
  }
  func.func @transform_5(%arg0: i32) -> (i32, i32) {
    %c0_i32 = arith.constant 0 : i32
    %c0_i32_0 = arith.constant 0 : i32
    %c0_i32_1 = arith.constant 0 : i32
    return %c0_i32, %c0_i32_0 : i32, i32
  }
  func.func @transform_6(%arg0: i32) -> (i32, i32) {
    %c0_i32 = arith.constant 0 : i32
    %c0_i32_0 = arith.constant 0 : i32
    return %arg0, %c0_i32 : i32, i32
  }
}

</mosaic_0001>

<bundles_post_ra>
// kernel: basic_block_forward.1
= control target key start
LH: loop header
LB: loop body
LE: loop exit
PB: predicated region body
PF: predicated region fallthrough
CT: control target
= control target key end

     0   :  { %s2624_s21 = smov 0   ;;  %s3048_s0 = inlined_call_operand.vmem [shape: bf16[128,48], index: 0, kind: input, shape index: {}]   ;;  %s3049_s1 = inlined_call_operand.vmem [shape: bf16[48,128], index: 1, kind: input, shape index: {}]   ;;  %s3050_s2 = inlined_call_operand.vmem [shape: f32[1,128], index: 2, kind: input, shape index: {}]   ;;  %s3051_s3 = inlined_call_operand.vmem [shape: bf16[1152,128], index: 3, kind: input, shape index: {}]   ;;  %s3052_s4 = inlined_call_operand.vmem [shape: f32[1,128], index: 4, kind: input, shape index: {}]   ;;  %s3053_s5 = inlined_call_operand.vmem [shape: bf16[48,128], index: 5, kind: input, shape index: {}]   ;;  %s3054_s6 = inlined_call_operand.vmem [shape: f32[128,128], index: 6, kind: output, shape index: {}]  }
   0x1 LB: > { %s1940_s22 = sadd.s32 4294967295, %s2586_s21   ;;  %p1944_p0 = scmp.ge.s32.totalorder %s2586_s21, 1  ;;  %s2586_s21 = sphi %s2624_s21, %s16_s21  }
   0x2   : > { %p213_p1 = scmp.lt.s32.totalorder %s2586_s21, 3 }
   0x4   : > { %p214_p2 = pnand %p1944_p0, %p213_p1 }
   0x5   : > { %v2498_v0 = vld [vmem:[%s3049_s1] sm:$0xff] (!%p214_p2)   ;;  %s1945_s25 = sshll.u32 (!%p214_p2), %s1940_s22, 3  ;;  %v2499_v1 = vld [vmem:[%s3049_s1 + $0x8] sm:$0xff] (!%p214_p2)   ;;  %v2500_v2 = vld [vmem:[%s3049_s1 + $0x10] sm:$0xff] (!%p214_p2)   ;;  %v2588_v3 = vmov (!%p214_p2), 0.0   ;;  %vm335_vm0 = vcmask (!%p214_p2), 392192  }
   0x6   : > { %217 = sbr.rel (%p214_p2) target bundleno = 597 (0x255), region = 44  ;;  %p244_p3 = scmp.lt.s32.totalorder (!%p214_p2), %s1945_s25, 15  ;;  %2165 = vmatprep.subr.bf16.mxu0 (!%p214_p2), %v2498_v0  ;;  %262 = vst [vmem:[#allocation2 + $0x30] sm:$0xff] (!%p214_p2), %v2588_v3  ;;  %263 = vst [vmem:[#allocation2 + $0x38] sm:$0x3] (!%p214_p2), %v2588_v3  ;;  %v2505_v5 = vld [vmem:[%s3053_s5] sm:$0xff] (!%p214_p2)  }
   0x7   : > { %2166 = vmatpush3.bf16.msra.mxu0 (!%p214_p2), %v2498_v0  ;;  %256 = vst [vmem:[#allocation2] sm:$0xff] (!%p214_p2), %v2588_v3  ;;  %257 = vst [vmem:[#allocation2 + $0x8] sm:$0x3] (!%p214_p2), %v2588_v3  ;;  %v2509_v8 = vld [vmem:[%s3051_s3 + $0x100] sm:$0xff] (!%p214_p2)   ;;  %v2506_v9 = vld [vmem:[%s3053_s5 + $0x8] sm:$0xff] (!%p214_p2)  }
   0x8   : > { %2167 = vmatprep.subr.bf16.mxu0 (!%p214_p2), %v2499_v1  ;;  %258 = vst [vmem:[#allocation2 + $0x10] sm:$0xff] (!%p214_p2), %v2588_v3  ;;  %259 = vst [vmem:[#allocation2 + $0x18] sm:$0x3] (!%p214_p2), %v2588_v3  ;;  %2289 = vmatprep.subr.bf16.mxu1 (!%p214_p2), %v2509_v8  ;;  %v2511_v10 = vld [vmem:[%s3051_s3 + $0x108] sm:$0xff] (!%p214_p2)   ;;  %v2513_v11 = vld [vmem:[%s3051_s3 + $0x110] sm:$0xff] (!%p214_p2)  }
   0x9   : > { %260 = vst [vmem:[#allocation2 + $0x20] sm:$0xff] (!%p214_p2), %v2588_v3  ;;  %261 = vst [vmem:[#allocation2 + $0x28] sm:$0x3] (!%p214_p2), %v2588_v3  ;;  %2290 = vmatpush3.bf16.msra.mxu1 (!%p214_p2), %v2509_v8  ;;  %v2507_v12 = vld [vmem:[%s3053_s5 + $0x10] sm:$0xff] (!%p214_p2)   ;;  %v2508_v14 = vld [vmem:[%s3051_s3] sm:$0xff] (!%p214_p2)  }
   0xa   : > { %264 = vst [vmem:[#allocation2 + $0x40] sm:$0xff] (!%p214_p2), %v2588_v3  ;;  %265 = vst [vmem:[#allocation2 + $0x48] sm:$0x3] (!%p214_p2), %v2588_v3  ;;  %2291 = vmatprep.subr.bf16.mxu1 (!%p214_p2), %v2511_v10  ;;  %v2515_v15 = vld [vmem:[%s3051_s3 + $0x118] sm:$0xff] (!%p214_p2)   ;;  %v2510_v16 = vld [vmem:[%s3051_s3 + $0x8] sm:$0xff] (!%p214_p2)  }
   0xb   : > { %266 = vst [vmem:[#allocation2 + $0x50] sm:$0xff] (!%p214_p2), %v2588_v3  ;;  %267 = vst [vmem:[#allocation2 + $0x58] sm:$0x3] (!%p214_p2), %v2588_v3  ;;  %2168 = vmatpush3.bf16.msra.mxu0 (!%p214_p2), %v2499_v1  ;;  %v2512_v17 = vld [vmem:[%s3051_s3 + $0x10] sm:$0xff] (!%p214_p2)   ;;  %v2514_v18 = vld [vmem:[%s3051_s3 + $0x18] sm:$0xff] (!%p214_p2)  }
   0xc   : > { %268 = vst [vmem:[#allocation2 + $0x60] sm:$0xff] (!%p214_p2), %v2588_v3  ;;  %269 = vst [vmem:[#allocation2 + $0x68] sm:$0x3] (!%p214_p2), %v2588_v3  ;;  %2169 = vmatprep.subr.bf16.mxu0 (!%p214_p2), %v2500_v2  ;;  %v2517_v19 = vld [vmem:[%s3051_s3 + $0x120] sm:$0xff] (!%p214_p2)   ;;  %v2519_v20 = vld [vmem:[%s3051_s3 + $0x128] sm:$0xff] (!%p214_p2)  }
   0xd   : > { %s3056_s25 = smov (!%p244_p3, %s1945_s25), 15  ;;  %270 = vst [vmem:[#allocation2 + $0x70] sm:$0xff] %v2588_v3  ;;  %271 = vst [vmem:[#allocation2 + $0x78] sm:$0x3] %v2588_v3  ;;  %2292 = vmatpush3.bf16.msra.mxu1 %v2511_v10  ;;  %v2516_v21 = vld [vmem:[%s3051_s3 + $0x20] sm:$0xff]   ;;  %v2521_v22 = vld [vmem:[%s3051_s3 + $0x130] sm:$0xff]  }
   0xe   : > { %s1946_s30 = sshll.u32 %s3056_s25, 2  ;;  %272 = vst [vmem:[#allocation2 + $0x80] sm:$0xff] %v2588_v3  ;;  %273 = vst [vmem:[#allocation2 + $0x88] sm:$0x3] %v2588_v3  ;;  %2293 = vmatprep.subr.bf16.mxu1 %v2513_v11  ;;  %v2518_v23 = vld [vmem:[%s3051_s3 + $0x28] sm:$0xff]   ;;  %v2523_v24 = vld [vmem:[%s3051_s3 + $0x138] sm:$0xff]  }
   0xf   : > { %274 = vst [vmem:[#allocation2 + $0x90] sm:$0xff] %v2588_v3  ;;  %275 = vst [vmem:[#allocation2 + $0x98] sm:$0x3] %v2588_v3  ;;  %s247_s9 = scalar_lea.vmem %s3048_s0, %s1946_s30  ;;  %2170 = vmatpush3.bf16.msra.mxu0 %v2500_v2  ;;  %v2520_v25 = vld [vmem:[%s3051_s3 + $0x30] sm:$0xff]   ;;  %v2525_v26 = vld [vmem:[%s3051_s3 + $0x140] sm:$0xff]   ;;  %s1948_s10 = sshll.u32 %s3056_s25, 3 }
  0x10   : > { %v2501_v4 = vld [vmem:[%s247_s9] sm:$0xff]   ;;  %v2502_v6 = vld [vmem:[%s247_s9 + $0x8] sm:$0xff]   ;;  %v2503_v7 = vld [vmem:[%s247_s9 + $0x10] sm:$0xff]   ;;  %2179 = vmatprep.subr.bf16.mxu0 %v2505_v5  ;;  %s3035_s13 = scalar_lea.vmem %s3054_s6, %s1948_s10 }
  0x11   : > { %2171 = vmatprep.mubr.msk.bf16.mxu0 %vm335_vm0, %v2501_v4  ;;  %v2504_v13 = vld [vmem:[%s247_s9 + $0x18] sm:$0xff]   ;;  %2294 = vmatpush3.bf16.msra.mxu1 %v2513_v11  ;;  %v2738_v28 = vld [vmem:[%s3051_s3 + $0x40] sm:$0xff]   ;;  %v2527_v48 = vld [vmem:[%s3051_s3 + $0x148] sm:$0xff]  }
  0x12   : > { %2172 = vmatmul.mubr.msk.bf16.vlgmr.msra.gmra.mrb[0].mxu0 %vm335_vm0, %v2502_v6  ;;  %2295 = vmatprep.subr.bf16.mxu1 %v2515_v15  ;;  %v2522_v27 = vld [vmem:[%s3051_s3 + $0x38] sm:$0xff]   ;;  %v1949_v29 = vld [vmem:[%s3050_s2] ss:$0 sm:$0xff]  ;;  %v2529_v58 = vld [vmem:[%s3051_s3 + $0x150] sm:$0xff]  }
  0x13   : > { %2175 = vmatprep.mubr.msk.bf16.mxu0 %vm335_vm0, %v2503_v7  ;;  %2180 = vmatpush3.bf16.msra.mxu0 %v2505_v5  ;;  %v2526_v5 = vld [vmem:[%s3051_s3 + $0x48] sm:$0xff]   ;;  %v2531_v8 = vld [vmem:[%s3051_s3 + $0x158] sm:$0xff]  }
  0x14   : > { %2181 = vmatprep.subr.bf16.mxu0 %v2506_v9 }
  0x15   : > { %2296 = vmatpush3.bf16.msra.mxu1 %v2515_v15 }
  0x16   : > { %2297 = vmatprep.subr.bf16.mxu1 %v2517_v19 }
  0x17   : > { %2182 = vmatpush3.bf16.msra.mxu0 %v2506_v9 }
  0x18   : > { %2183 = vmatprep.subr.bf16.mxu0 %v2507_v12 }
  0x19   : > { %2298 = vmatpush3.bf16.msra.mxu1 %v2517_v19 }
  0x1a   : > { %2176 = vmatmul.mubr.msk.bf16.gmra.mrb[4].mxu0 %vm335_vm0, %v2504_v13  ;;  %2299 = vmatprep.subr.bf16.mxu1 %v2519_v20 }
  0x1b   : > { %2184 = vmatpush3.bf16.msra.mxu0 %v2507_v12  ;;  %2185 = vmatprep.mubr.msk.bf16.mxu0 %vm335_vm0, %v2501_v4 }
  0x1c   : > { %2193 = vmatprep.subr.bf16.mxu0 %v2508_v14 }
  0x1d   : > { %2300 = vmatpush3.bf16.msra.mxu1 %v2519_v20 }
  0x1e   : > { %2301 = vmatprep.subr.bf16.mxu1 %v2521_v22 }
  0x21   : > { %2302 = vmatpush3.bf16.msra.mxu1 %v2521_v22 }
  0x22   : > { %2186 = vmatmul.mubr.msk.bf16.vlgmr.msra.gmra.mrb[8].mxu0 %vm335_vm0, %v2502_v6  ;;  %2303 = vmatprep.subr.bf16.mxu1 %v2523_v24 }
  0x23   : > { %2194 = vmatpush3.bf16.msra.mxu0 %v2508_v14  ;;  %2189 = vmatprep.mubr.msk.bf16.mxu0 %vm335_vm0, %v2503_v7 }
  0x24   : > { %2195 = vmatprep.subr.bf16.mxu0 %v2510_v16 }
  0x25   : > { %2304 = vmatpush3.bf16.msra.mxu1 %v2523_v24  ;;  %v2535_v24 = vld [vmem:[%s3051_s3 + $0x168] sm:$0xff]  }
  0x26   : > { %2313 = vmatprep.subr.bf16.mxu1 %v2525_v26 }
  0x27   : > { %2196 = vmatpush3.bf16.msra.mxu0 %v2510_v16 }
  0x28   : > { %2197 = vmatprep.subr.bf16.mxu0 %v2512_v17 }
  0x2a   : > { %2190 = vmatmul.mubr.msk.bf16.gmra.mrb[12].mxu0 %vm335_vm0, %v2504_v13  ;;  %v2528_v13 = vld [vmem:[%s3051_s3 + $0x50] sm:$0xff]  }
  0x2b   : > { %2198 = vmatpush3.bf16.msra.mxu0 %v2512_v17  ;;  %v675_v17 = vld [vmem:[#allocation2 + $0x1] sm:$0xff] }
  0x2c   : > { %2199 = vmatprep.subr.bf16.mxu0 %v2514_v18 }
  0x2f   : > { %2200 = vmatpush3.bf16.msra.mxu0 %v2514_v18  ;;  %v2533_v18 = vld [vmem:[%s3051_s3 + $0x160] sm:$0xff]  }
  0x30   : > { %2201 = vmatprep.subr.bf16.mxu0 %v2516_v21 }
  0x33   : > { %2202 = vmatpush3.bf16.msra.mxu0 %v2516_v21  ;;  %v2530_v21 = vld [vmem:[%s3051_s3 + $0x58] sm:$0xff]  }
  0x34   : > { %2203 = vmatprep.subr.bf16.mxu0 %v2518_v23 }
  0x37   : > { %2204 = vmatpush3.bf16.msra.mxu0 %v2518_v23 }
  0x38   : > { %2205 = vmatprep.subr.bf16.mxu0 %v2520_v25 }
  0x3b   : > { %2206 = vmatpush3.bf16.msra.mxu0 %v2520_v25  ;;  %v2532_v25 = vld [vmem:[%s3051_s3 + $0x60] sm:$0xff]  }
  0x3c   : > { %2207 = vmatprep.subr.bf16.mxu0 %v2522_v27 }
  0x3f   : > { %2208 = vmatpush3.bf16.msra.mxu0 %v2522_v27  ;;  %v2534_v27 = vld [vmem:[%s3051_s3 + $0x68] sm:$0xff]  }
  0x40   : > { %2217 = vmatprep.subr.bf16.mxu0 %v2738_v28 }
  0xe5   : > { %v2173_v30 = vpop.f32.mrb[0].mxu0 }
  0xe6   : > { %v391_v31 = vadd.f32 %v2173_v30, %v1949_v29  ;;  %v382_v32 = vpop.f32.mrb[1].mxu0  ;;  %v2541_v30 = vld [vmem:[%s3051_s3 + $0x180] sm:$0xff]  }
  0xe7   : > { %v383_v33 = vadd.f32 %v1949_v29, %v382_v32  ;;  %v2174_v34 = vpop.f32.mrb[2].mxu0  ;;  %v2538_v32 = vld [vmem:[%s3051_s3 + $0x78] sm:$0xff]  }
  0xe8   : > { %v415_v35 = vmax.f32 %v391_v31, 0.0  ;;  %v394_v36 = vadd.f32 %v2174_v34, %v1949_v29  ;;  %v385_v37 = vpop.f32.mrb[3].mxu0 }
  0xe9   : > { %v2744_v38 = vmax.f32 %v383_v33, 0.0  ;;  %v386_v39 = vadd.f32 %v1949_v29, %v385_v37  ;;  %v2543_v37 = vld [vmem:[%s3051_s3 + $0x188] sm:$0xff]  }
  0xea   : > { %424 = vst [vmem:[#allocation2 + $0x31] sm:$0xff] %v415_v35  ;;  %v416_v40 = vmax.f32 %v394_v36, 0.0 }
  0xeb   : > { %422 = vst [vmem:[#allocation2 + $0x11] sm:$0xff] %v2744_v38  ;;  %v414_v41 = vmax.f32 %v386_v39, 0.0  ;;  %v683_v22 = vpack.c.bf16 %v2744_v38, %v675_v17  ;;  %v2540_v39 = vld [vmem:[%s3051_s3 + $0x80] sm:$0xff]   ;;  %v2560_v17 = vld [vmem:[%s3051_s3 + $0xd0] sm:$0xff]  }
  0xec   : > { %425 = vst [vmem:[#allocation2 + $0x41] sm:$0xff] %v416_v40  ;;  %v1131_v42 = vpack.c.bf16 %v416_v40, %v415_v35 }
  0xed   : > { %423 = vst [vmem:[#allocation2 + $0x21] sm:$0xff] %v414_v41  ;;  %v2177_v43 = vpop.f32.mrb[4].mxu0  ;;  %v1130_v44 = vpack.c.bf16 %v414_v41, %v2744_v38  ;;  %v2748_v45 = vpack.c.bf16 %v415_v35, %v414_v41 }
  0xee   : > { %v407_v46 = vadd.f32 %v2177_v43, %v1949_v29  ;;  %v398_v47 = vpop.f32.mrb[5].mxu0  ;;  %v2542_v43 = vld [vmem:[%s3051_s3 + $0x88] sm:$0xff]  }
  0xef   : > { %v399_v49 = vadd.f32 %v1949_v29, %v398_v47  ;;  %v2178_v50 = vpop.f32.mrb[6].mxu0  ;;  %2305 = vmatprep.mubr.bf16.mxu1 %v1130_v44  ;;  %v2544_v47 = vld [vmem:[%s3051_s3 + $0x90] sm:$0xff]  }
  0xf0   : > { %v419_v51 = vmax.f32 %v407_v46, 0.0  ;;  %v410_v52 = vadd.f32 %v2178_v50, %v1949_v29  ;;  %v401_v53 = vpop.f32.mrb[7].mxu0  ;;  %2306 = vmatmul.mubr.bf16.vlgmr.msra.gmra.mrb[0].mxu1 %v1131_v42  ;;  %v2547_v46 = vld [vmem:[%s3051_s3 + $0x198] sm:$0xff]  }
  0xf1   : > { %v417_v54 = vmax.f32 %v399_v49, 0.0  ;;  %v402_v55 = vadd.f32 %v1949_v29, %v401_v53  ;;  %2314 = vmatpush3.bf16.msra.mxu1 %v2525_v26  ;;  %v2762_v61 = vld [vmem:[#allocation2 + $0x30] sm:$0xff]  ;;  %v2549_v49 = vld [vmem:[%s3051_s3 + $0x1a0] sm:$0xff]   ;;  %v2546_v50 = vld [vmem:[%s3051_s3 + $0x98] sm:$0xff]  }
  0xf2   : > { %428 = vst [vmem:[#allocation2 + $0x71] sm:$0xff] %v419_v51  ;;  %v2753_v56 = vmax.f32 %v410_v52, 0.0  ;;  %v2755_v57 = vld [vmem:[#allocation2 + $0x10] sm:$0xff]  ;;  %2315 = vmatprep.subr.bf16.mxu1 %v2527_v48  ;;  %v2551_v52 = vld [vmem:[%s3051_s3 + $0x1a8] sm:$0xff]   ;;  %v2548_v53 = vld [vmem:[%s3051_s3 + $0xa0] sm:$0xff]  }
  0xf3   : > { %426 = vst [vmem:[#allocation2 + $0x51] sm:$0xff] %v417_v54  ;;  %v418_v59 = vmax.f32 %v402_v55, 0.0  ;;  %v534_v60 = vpack.c.bf16 %v2755_v57, %v2588_v3  ;;  %v2764_v62 = vld [vmem:[#allocation2 + $0x40] sm:$0xff]  ;;  %v2766_v63 = vpack.c.bf16 %v417_v54, %v416_v40  ;;  %v2791_v11 = vld [vmem:[#allocation2 + $0x12] sm:$0xff]  ;;  %v2550_v55 = vld [vmem:[%s3051_s3 + $0xa8] sm:$0xff]  }
  0xf4   : > { %429 = vst [vmem:[#allocation2 + $0x81] sm:$0xff] %v2753_v56  ;;  %v2769_v0 = vld [vmem:[#allocation2 + $0x20] sm:$0xff]  ;;  %v1133_v1 = vpack.c.bf16 %v2753_v56, %v419_v51  ;;  %v982_v2 = vpack.c.bf16 %v2764_v62, %v2762_v61  ;;  %v2537_v26 = vld [vmem:[%s3051_s3 + $0x170] sm:$0xff]  }
  0xf5   : > { %427 = vst [vmem:[#allocation2 + $0x61] sm:$0xff] %v418_v59  ;;  %2209 = vmatprep.mubr.bf16.mxu0 %v534_v60  ;;  %v2776_v4 = vpack.c.bf16 %v2762_v61, %v2769_v0  ;;  %2316 = vmatpush3.bf16.msra.mxu1 %v2527_v48  ;;  %v1132_v6 = vpack.c.bf16 %v418_v59, %v417_v54  ;;  %v2781_v7 = vld [vmem:[#allocation2 + $0x22] sm:$0xff]  ;;  %v2536_v29 = vld [vmem:[%s3051_s3 + $0x70] sm:$0xff]  }
  0xf6   : > { %2317 = vmatprep.subr.bf16.mxu1 %v2529_v58  ;;  %v2786_v9 = vpack.c.bf16 %v419_v51, %v418_v59  ;;  %v981_v10 = vpack.c.bf16 %v2769_v0, %v2755_v57  ;;  %v1279_v12 = vpack.c.bf16 %v2781_v7, %v2791_v11  ;;  %v2845_v31 = vld [vmem:[#allocation2 + $0x42] sm:$0xff]  ;;  %v2852_v34 = vld [vmem:[#allocation2 + $0x32] sm:$0xff] }
  0xf7   : > { %2210 = vmatmul.mubr.bf16.vlgmr.msra.gmra.mrb[8].mxu0 %v2776_v4  ;;  %2309 = vmatprep.mubr.bf16.mxu1 %v1132_v6  ;;  %v1280_v35 = vpack.c.bf16 %v2845_v31, %v2852_v34  ;;  %v2545_v40 = vld [vmem:[%s3051_s3 + $0x190] sm:$0xff]   ;;  %v824_v48 = vld [vmem:[#allocation2 + $0x2] sm:$0xff]  ;;  %v2571_v57 = vld [vmem:[%s3051_s3 + $0x1f8] sm:$0xff]  }
  0xf8   : > { %2218 = vmatpush3.bf16.msra.mxu0 %v2738_v28  ;;  %2310 = vmatmul.mubr.bf16.gmra.mrb[4].mxu1 %v1133_v1  ;;  %v2539_v28 = vld [vmem:[%s3051_s3 + $0x178] sm:$0xff]   ;;  %v832_v51 = vpack.c.bf16 %v2791_v11, %v824_v48  ;;  %v2553_v54 = vld [vmem:[%s3051_s3 + $0x1b0] sm:$0xff]   ;;  %v2557_v60 = vld [vmem:[%s3051_s3 + $0x1c0] sm:$0xff]   ;;  %v2934_v11 = vpack.c.bf16 %v2852_v34, %v2781_v7 }
  0xf9   : > { %2219 = vmatprep.subr.bf16.mxu0 %v2526_v5  ;;  %2318 = vmatpush3.bf16.msra.mxu1 %v2529_v58  ;;  %v2801_v15 = vld [vmem:[#allocation2 + $0x70] sm:$0xff]  ;;  %v2555_v58 = vld [vmem:[%s3051_s3 + $0x1b8] sm:$0xff]   ;;  %v2576_v61 = vld [vmem:[%s3051_s3 + $0x220] sm:$0xff]  }
  0xfa   : > { %v2799_v14 = vld [vmem:[#allocation2 + $0x50] sm:$0xff]  ;;  %2329 = vmatprep.mubr.bf16.mxu1 %v1279_v12  ;;  %2319 = vmatprep.subr.bf16.mxu1 %v2531_v8  ;;  %v2554_v1 = vld [vmem:[%s3051_s3 + $0xb8] sm:$0xff]   ;;  %v2558_v12 = vld [vmem:[%s3051_s3 + $0xc8] sm:$0xff]  }
  0xfb   : > { %v2805_v16 = vpack.c.bf16 %v2799_v14, %v2764_v62  ;;  %v2856_v36 = vld [vmem:[#allocation2 + $0x52] sm:$0xff]  ;;  %v2871_v42 = vld [vmem:[#allocation2 + $0x82] sm:$0xff] }
  0xfc   : > { %2220 = vmatpush3.bf16.msra.mxu0 %v2526_v5  ;;  %v2810_v19 = vld [vmem:[#allocation2 + $0x60] sm:$0xff]  ;;  %v2869_v41 = vld [vmem:[#allocation2 + $0x72] sm:$0xff]  ;;  %v2577_v62 = vld [vmem:[%s3051_s3 + $0x228] sm:$0xff]  }
  0xfd   : > { %2213 = vmatprep.mubr.bf16.mxu0 %v2805_v16  ;;  %2221 = vmatprep.subr.bf16.mxu0 %v2528_v13  ;;  %v2815_v20 = vpack.c.bf16 %v2801_v15, %v2810_v19  ;;  %v983_v23 = vpack.c.bf16 %v2810_v19, %v2799_v14  ;;  %v2850_v33 = vld [vmem:[#allocation2 + $0x62] sm:$0xff]  ;;  %v1282_v44 = vpack.c.bf16 %v2871_v42, %v2869_v41  ;;  %v2552_v59 = vld [vmem:[%s3051_s3 + $0xb0] sm:$0xff]   ;;  %v2563_v7 = vld [vmem:[%s3051_s3 + $0x1d8] sm:$0xff]  }
  0xfe   : > { %2320 = vmatpush3.bf16.msra.mxu1 %v2531_v8  ;;  %v1281_v38 = vpack.c.bf16 %v2850_v33, %v2856_v36  ;;  %v2556_v5 = vld [vmem:[%s3051_s3 + $0xc0] sm:$0xff]   ;;  %v2561_v6 = vld [vmem:[%s3051_s3 + $0x1d0] sm:$0xff]  }
  0xff   : > { %2214 = vmatmul.mubr.bf16.gmra.mrb[12].mxu0 %v2815_v20  ;;  %2321 = vmatprep.subr.bf16.mxu1 %v2533_v18  ;;  %v2930_v8 = vld [vmem:[#allocation2 + $0x80] sm:$0xff]  ;;  %v2568_v0 = vld [vmem:[%s3051_s3 + $0xf0] sm:$0xff]  }
 0x100   : > { %2222 = vmatpush3.bf16.msra.mxu0 %v2528_v13  ;;  %2233 = vmatprep.mubr.bf16.mxu0 %v683_v22  ;;  %v2941_v13 = vpack.c.bf16 %v2856_v36, %v2845_v31  ;;  %v2569_v22 = vld [vmem:[%s3051_s3 + $0x1f0] sm:$0xff]   ;;  %v1961_v36 = vld [vmem:[%s3052_s4] ss:$0 sm:$0xff] }
 0x101   : > { %2223 = vmatprep.subr.bf16.mxu0 %v2530_v21  ;;  %v1726_v14 = vld [vmem:[#allocation2 + $0x92] sm:$0xff] }
 0x102   : > { %2322 = vmatpush3.bf16.msra.mxu1 %v2533_v18  ;;  %v2959_v18 = vpack.c.bf16 %v2869_v41, %v2850_v33 }
 0x103   : > { %2323 = vmatprep.subr.bf16.mxu1 %v2535_v24 }
 0x104   : > { %2224 = vmatpush3.bf16.msra.mxu0 %v2530_v21  ;;  %v2564_v21 = vld [vmem:[%s3051_s3 + $0xe0] sm:$0xff]  }
 0x105   : > { %2225 = vmatprep.subr.bf16.mxu0 %v2532_v25 }
 0x106   : > { %2324 = vmatpush3.bf16.msra.mxu1 %v2535_v24  ;;  %v2566_v24 = vld [vmem:[%s3051_s3 + $0xe8] sm:$0xff]  }
 0x107   : > { %2325 = vmatprep.subr.bf16.mxu1 %v2537_v26 }
 0x108   : > { %2226 = vmatpush3.bf16.msra.mxu0 %v2532_v25  ;;  %v2570_v25 = vld [vmem:[%s3051_s3 + $0xf8] sm:$0xff]  }
 0x109   : > { %2227 = vmatprep.subr.bf16.mxu0 %v2534_v27 }
 0x10a   : > { %2326 = vmatpush3.bf16.msra.mxu1 %v2537_v26  ;;  %v2573_v26 = vld [vmem:[%s3051_s3 + $0x208] sm:$0xff]  }
 0x10b   : > { %2327 = vmatprep.subr.bf16.mxu1 %v2539_v28 }
 0x10c   : > { %2228 = vmatpush3.bf16.msra.mxu0 %v2534_v27  ;;  %v2574_v27 = vld [vmem:[%s3051_s3 + $0x210] sm:$0xff]  }
 0x10d   : > { %2229 = vmatprep.subr.bf16.mxu0 %v2536_v29 }
 0x10e   : > { %2328 = vmatpush3.bf16.msra.mxu1 %v2539_v28  ;;  %v1577_v28 = vld [vmem:[#allocation2 + $0x91] sm:$0xff] }
 0x10f   : > { %2337 = vmatprep.subr.bf16.mxu1 %v2541_v30 }
 0x110   : > { %2230 = vmatpush3.bf16.msra.mxu0 %v2536_v29  ;;  %v1581_v29 = vpack.c.bf16 %v1577_v28, %v2753_v56  ;;  %v984_v56 = vpack.c.bf16 %v2930_v8, %v2801_v15  ;;  %v1730_v15 = vpack.c.bf16 %v1726_v14, %v2871_v42 }
 0x111   : > { %2231 = vmatprep.subr.bf16.mxu0 %v2538_v32  ;;  %2330 = vmatmul.mubr.bf16.vlgmr.msra.gmra.mrb[0].mxu1 %v1280_v35 }
 0x112   : > { %2333 = vmatprep.mubr.bf16.mxu1 %v1281_v38  ;;  %2338 = vmatpush3.bf16.msra.mxu1 %v2541_v30 }
 0x113   : > { %2339 = vmatprep.subr.bf16.mxu1 %v2543_v37 }
 0x114   : > { %2232 = vmatpush3.bf16.msra.mxu0 %v2538_v32 }
 0x115   : > { %2241 = vmatprep.subr.bf16.mxu0 %v2540_v39 }
 0x116   : > { %2340 = vmatpush3.bf16.msra.mxu1 %v2543_v37 }
 0x117   : > { %2234 = vmatmul.mubr.bf16.vlgmr.msra.gmra.mrb[8].mxu0 %v2748_v45  ;;  %2341 = vmatprep.subr.bf16.mxu1 %v2545_v40 }
 0x118   : > { %2237 = vmatprep.mubr.bf16.mxu0 %v2766_v63  ;;  %2242 = vmatpush3.bf16.msra.mxu0 %v2540_v39 }
 0x119   : > { %2243 = vmatprep.subr.bf16.mxu0 %v2542_v43  ;;  %2334 = vmatmul.mubr.bf16.gmra.mrb[4].mxu1 %v1282_v44 }
 0x11a   : > { %2342 = vmatpush3.bf16.msra.mxu1 %v2545_v40  ;;  %2353 = vmatprep.mubr.bf16.mxu1 %v2776_v4  ;;  %v2559_v4 = vld [vmem:[%s3051_s3 + $0x1c8] sm:$0xff]  }
 0x11b   : > { %2343 = vmatprep.subr.bf16.mxu1 %v2547_v46 }
 0x11c   : > { %2244 = vmatpush3.bf16.msra.mxu0 %v2542_v43 }
 0x11d   : > { %2245 = vmatprep.subr.bf16.mxu0 %v2544_v47 }
 0x11e   : > { %2344 = vmatpush3.bf16.msra.mxu1 %v2547_v46 }
 0x11f   : > { %2238 = vmatmul.mubr.bf16.gmra.mrb[12].mxu0 %v2786_v9  ;;  %2345 = vmatprep.subr.bf16.mxu1 %v2549_v49 }
 0x120   : > { %2246 = vmatpush3.bf16.msra.mxu0 %v2544_v47  ;;  %2257 = vmatprep.mubr.bf16.mxu0 %v832_v51 }
 0x121   : > { %2247 = vmatprep.subr.bf16.mxu0 %v2546_v50 }
 0x122   : > { %2346 = vmatpush3.bf16.msra.mxu1 %v2549_v49 }
 0x123   : > { %2347 = vmatprep.subr.bf16.mxu1 %v2551_v52 }
 0x124   : > { %2248 = vmatpush3.bf16.msra.mxu0 %v2546_v50 }
 0x125   : > { %2249 = vmatprep.subr.bf16.mxu0 %v2548_v53 }
 0x126   : > { %2348 = vmatpush3.bf16.msra.mxu1 %v2551_v52 }
 0x127   : > { %2349 = vmatprep.subr.bf16.mxu1 %v2553_v54 }
 0x128   : > { %2250 = vmatpush3.bf16.msra.mxu0 %v2548_v53 }
 0x129   : > { %2251 = vmatprep.subr.bf16.mxu0 %v2550_v55 }
 0x12a   : > { %2350 = vmatpush3.bf16.msra.mxu1 %v2553_v54 }
 0x12b   : > { %2351 = vmatprep.subr.bf16.mxu1 %v2555_v58 }
 0x12c   : > { %2252 = vmatpush3.bf16.msra.mxu0 %v2550_v55 }
 0x12d   : > { %2253 = vmatprep.subr.bf16.mxu0 %v2552_v59 }
 0x12e   : > { %2352 = vmatpush3.bf16.msra.mxu1 %v2555_v58 }
 0x12f   : > { %2361 = vmatprep.subr.bf16.mxu1 %v2557_v60 }
 0x130   : > { %2254 = vmatpush3.bf16.msra.mxu0 %v2552_v59 }
 0x131   : > { %2255 = vmatprep.subr.bf16.mxu0 %v2554_v1  ;;  %2354 = vmatmul.mubr.bf16.vlgmr.msra.gmra.mrb[0].mxu1 %v2805_v16  ;;  %v1432_v16 = vpack.c.bf16 %v2588_v3, %v2930_v8  ;;  %v2565_v3 = vld [vmem:[%s3051_s3 + $0x1e0] sm:$0xff]  }
 0x132   : > { %2357 = vmatprep.mubr.bf16.mxu1 %v2815_v20  ;;  %2362 = vmatpush3.bf16.msra.mxu1 %v2557_v60  ;;  %v2562_v20 = vld [vmem:[%s3051_s3 + $0xd8] sm:$0xff]  }
 0x133   : > { %2363 = vmatprep.subr.bf16.mxu1 %v2559_v4 }
 0x134   : > { %2256 = vmatpush3.bf16.msra.mxu0 %v2554_v1 }
 0x135   : > { %2265 = vmatprep.subr.bf16.mxu0 %v2556_v5 }
 0x136   : > { %2364 = vmatpush3.bf16.msra.mxu1 %v2559_v4 }
 0x137   : > { %2258 = vmatmul.mubr.bf16.vlgmr.msra.gmra.mrb[8].mxu0 %v2934_v11  ;;  %2365 = vmatprep.subr.bf16.mxu1 %v2561_v6 }
 0x138   : > { %2261 = vmatprep.mubr.bf16.mxu0 %v2941_v13  ;;  %2266 = vmatpush3.bf16.msra.mxu0 %v2556_v5 }
 0x139   : > { %2267 = vmatprep.subr.bf16.mxu0 %v2558_v12  ;;  %2358 = vmatmul.mubr.bf16.gmra.mrb[4].mxu1 %v1432_v16 }
 0x13a   : > { %2366 = vmatpush3.bf16.msra.mxu1 %v2561_v6  ;;  %2377 = vmatprep.mubr.bf16.mxu1 %v2748_v45  ;;  %v2567_v45 = vld [vmem:[%s3051_s3 + $0x1e8] sm:$0xff]  }
 0x13b   : > { %2367 = vmatprep.subr.bf16.mxu1 %v2563_v7 }
 0x13c   : > { %2268 = vmatpush3.bf16.msra.mxu0 %v2558_v12 }
 0x13d   : > { %2269 = vmatprep.subr.bf16.mxu0 %v2560_v17 }
 0x13e   : > { %2368 = vmatpush3.bf16.msra.mxu1 %v2563_v7 }
 0x13f   : > { %2262 = vmatmul.mubr.bf16.gmra.mrb[12].mxu0 %v2959_v18  ;;  %2369 = vmatprep.subr.bf16.mxu1 %v2565_v3 }
 0x140   : > { %2270 = vmatpush3.bf16.msra.mxu0 %v2560_v17  ;;  %2281 = vmatprep.mubr.bf16.mxu0 %v981_v10  ;;  %v2572_v10 = vld [vmem:[%s3051_s3 + $0x200] sm:$0xff]  }
 0x141   : > { %2271 = vmatprep.subr.bf16.mxu0 %v2562_v20 }
 0x142   : > { %2370 = vmatpush3.bf16.msra.mxu1 %v2565_v3 }
 0x143   : > { %2371 = vmatprep.subr.bf16.mxu1 %v2567_v45 }
 0x144   : > { %2272 = vmatpush3.bf16.msra.mxu0 %v2562_v20 }
 0x145   : > { %2273 = vmatprep.subr.bf16.mxu0 %v2564_v21 }
 0x146   : > { %2372 = vmatpush3.bf16.msra.mxu1 %v2567_v45 }
 0x147   : > { %2373 = vmatprep.subr.bf16.mxu1 %v2569_v22 }
 0x148   : > { %2274 = vmatpush3.bf16.msra.mxu0 %v2564_v21 }
 0x149   : > { %2275 = vmatprep.subr.bf16.mxu0 %v2566_v24 }
 0x14a   : > { %2374 = vmatpush3.bf16.msra.mxu1 %v2569_v22 }
 0x14b   : > { %2375 = vmatprep.subr.bf16.mxu1 %v2571_v57 }
 0x14c   : > { %2276 = vmatpush3.bf16.msra.mxu0 %v2566_v24 }
 0x14d   : > { %2277 = vmatprep.subr.bf16.mxu0 %v2568_v0 }
 0x14e   : > { %2376 = vmatpush3.bf16.msra.mxu1 %v2571_v57 }
 0x14f   : > { %2385 = vmatprep.subr.bf16.mxu1 %v2572_v10 }
 0x150   : > { %2278 = vmatpush3.bf16.msra.mxu0 %v2568_v0 }
 0x151   : > { %2279 = vmatprep.subr.bf16.mxu0 %v2570_v25  ;;  %2378 = vmatmul.mubr.bf16.vlgmr.msra.gmra.mrb[0].mxu1 %v2766_v63  ;;  %v2575_v63 = vld [vmem:[%s3051_s3 + $0x218] sm:$0xff]  }
 0x152   : > { %2381 = vmatprep.mubr.bf16.mxu1 %v2786_v9  ;;  %2386 = vmatpush3.bf16.msra.mxu1 %v2572_v10  ;;  %v2579_v9 = vld [vmem:[%s3051_s3 + $0x238] sm:$0xff]  }
 0x153   : > { %2387 = vmatprep.subr.bf16.mxu1 %v2573_v26 }
 0x154   : > { %2280 = vmatpush3.bf16.msra.mxu0 %v2570_v25 }
 0x156   : > { %2388 = vmatpush3.bf16.msra.mxu1 %v2573_v26 }
 0x157   : > { %2282 = vmatmul.mubr.bf16.vlgmr.msra.gmra.mrb[8].mxu0 %v982_v2  ;;  %2389 = vmatprep.subr.bf16.mxu1 %v2574_v27  ;;  %v2578_v2 = vld [vmem:[%s3051_s3 + $0x230] sm:$0xff]  }
 0x158   : > { %2285 = vmatprep.mubr.bf16.mxu0 %v983_v23 }
 0x159   : > { %2382 = vmatmul.mubr.bf16.gmra.mrb[4].mxu1 %v1581_v29 }
 0x15a   : > { %2390 = vmatpush3.bf16.msra.mxu1 %v2574_v27  ;;  %2401 = vmatprep.mubr.bf16.mxu1 %v2934_v11 }
 0x15b   : > { %2391 = vmatprep.subr.bf16.mxu1 %v2575_v63 }
 0x15e   : > { %2392 = vmatpush3.bf16.msra.mxu1 %v2575_v63 }
 0x15f   : > { %2286 = vmatmul.mubr.bf16.gmra.mrb[12].mxu0 %v984_v56  ;;  %2393 = vmatprep.subr.bf16.mxu1 %v2576_v61 }
 0x162   : > { %2394 = vmatpush3.bf16.msra.mxu1 %v2576_v61 }
 0x163   : > { %2395 = vmatprep.subr.bf16.mxu1 %v2577_v62 }
 0x166   : > { %2396 = vmatpush3.bf16.msra.mxu1 %v2577_v62 }
 0x167   : > { %2397 = vmatprep.subr.bf16.mxu1 %v2578_v2 }
 0x16a   : > { %2398 = vmatpush3.bf16.msra.mxu1 %v2578_v2 }
 0x16b   : > { %2399 = vmatprep.subr.bf16.mxu1 %v2579_v9 }
 0x16e   : > { %2400 = vmatpush3.bf16.msra.mxu1 %v2579_v9 }
 0x171   : > { %2402 = vmatmul.mubr.bf16.vlgmr.msra.gmra.mrb[0].mxu1 %v2941_v13 }
 0x172   : > { %2405 = vmatprep.mubr.bf16.mxu1 %v2959_v18 }
 0x179   : > { %2406 = vmatmul.mubr.bf16.gmra.mrb[4].mxu1 %v1730_v15 }
 0x22a   : > { %v2283_v19 = vpop.f32.mrb[8].mxu0 }
 0x22b   : > { %v1083_v23 = vpop.f32.mrb[9].mxu0  ;;  %v2409_v37 = vadd.f32 %v2283_v19, %v1961_v36 }
 0x22c   : > { %v2284_v30 = vpop.f32.mrb[10].mxu0  ;;  %v2411_v38 = vadd.f32 %v1961_v36, %v1083_v23 }
 0x22d   : > { %v1086_v31 = vpop.f32.mrb[11].mxu0  ;;  %v2413_v40 = vadd.f32 %v2284_v30, %v1961_v36 }
 0x22e   : > { %v2415_v43 = vadd.f32 %v1961_v36, %v1086_v31 }
 0x232   : > { %v2287_v32 = vpop.f32.mrb[12].mxu0 }
 0x233   : > { %v1099_v33 = vpop.f32.mrb[13].mxu0  ;;  %v2417_v54 = vadd.f32 %v2287_v32, %v1961_v36 }
 0x234   : > { %v2288_v34 = vpop.f32.mrb[14].mxu0  ;;  %v2419_v55 = vadd.f32 %v1961_v36, %v1099_v33 }
 0x235   : > { %v1102_v35 = vpop.f32.mrb[15].mxu0  ;;  %v2421_v59 = vadd.f32 %v2288_v34, %v1961_v36 }
 0x236   : > { %v2423_v4 = vadd.f32 %v1961_v36, %v1102_v35 }
 0x244   : > { %v2403_v39 = vpop.f32.mrb[0].mxu1 }
 0x245   : > { %v2410_v41 = vadd.f32 %v2409_v37, %v2403_v39  ;;  %v1829_v42 = vpop.f32.mrb[1].mxu1 }
 0x246   : > { %v2412_v44 = vadd.f32 %v2411_v38, %v1829_v42  ;;  %v2404_v46 = vpop.f32.mrb[2].mxu1 }
 0x247   : > { %v1870_v47 = vmax.f32 %v2410_v41, 0.0  ;;  %v2414_v48 = vadd.f32 %v2413_v40, %v2404_v46  ;;  %v1832_v49 = vpop.f32.mrb[3].mxu1 }
 0x248   : > { %v1868_v50 = vmax.f32 %v2412_v44, 0.0  ;;  %v2416_v51 = vadd.f32 %v2415_v43, %v1832_v49 }
 0x249   : > { %1878 = vst [vmem:[%s3035_s13 + $0x10] sm:$0xff] %v1870_v47  ;;  %v1871_v52 = vmax.f32 %v2414_v48, 0.0 }
 0x24a   : > { %1876 = vst [vmem:[%s3035_s13] sm:$0xff] %v1868_v50  ;;  %v1869_v53 = vmax.f32 %v2416_v51, 0.0 }
 0x24b   : > { %1879 = vst [vmem:[%s3035_s13 + $0x18] sm:$0xff] %v1871_v52 }
 0x24c   : > { %1877 = vst [vmem:[%s3035_s13 + $0x8] sm:$0xff] %v1869_v53  ;;  %v2407_v58 = vpop.f32.mrb[4].mxu1 }
 0x24d   : > { %v2418_v60 = vadd.f32 %v2417_v54, %v2407_v58  ;;  %v1845_v1 = vpop.f32.mrb[5].mxu1 }
 0x24e   : > { %v2420_v5 = vadd.f32 %v2419_v55, %v1845_v1  ;;  %v2408_v6 = vpop.f32.mrb[6].mxu1 }
 0x24f   : > { %v1874_v8 = vmax.f32 %v2418_v60, 0.0  ;;  %v2422_v11 = vadd.f32 %v2421_v59, %v2408_v6  ;;  %v1848_v12 = vpop.f32.mrb[7].mxu1 }
 0x250   : > { %v1872_v13 = vmax.f32 %v2420_v5, 0.0  ;;  %v2424_v16 = vadd.f32 %v2423_v4, %v1848_v12 }
 0x251   : > { %1882 = vst [vmem:[%s3035_s13 + $0x30] sm:$0xff] %v1874_v8  ;;  %v1875_v7 = vmax.f32 %v2422_v11, 0.0 }
 0x252   : > { %1880 = vst [vmem:[%s3035_s13 + $0x20] sm:$0xff] %v1872_v13  ;;  %v1873_v17 = vmax.f32 %v2424_v16, 0.0 }
 0x253   : > { %1883 = vst [vmem:[%s3035_s13 + $0x38] sm:$0xff] %v1875_v7 }
 0x254   : > { %1881 = vst [vmem:[%s3035_s13 + $0x28] sm:$0xff] %v1873_v17 }
 0x255 PF: > { %s16_s21 = sadd.s32 1, %s2586_s21  }
 0x256   : > { %p13_p4 = scmp.ge.s32.totalorder %s16_s21, 4  }
 0x258   :  { %15 = sbr.rel (!%p13_p4) target bundleno = 1 (0x1), region = 76 }

</bundles_post_ra>
